<compile_context>
chip_gen: v7x
topology: tpu7x:2x2x1
jax: 0.10.0
libtpu: 0.0.40
codegen_flags: <defaults>
</compile_context>

<pallas_src>
import jax
import jax.numpy as jnp
from jax.experimental import pallas as pl
from jax.experimental.pallas import tpu as pltpu

LANE = 128


def _round_up(x, m):
    return (x + m - 1) // m * m


# ---------------------------------------------------------------------------
# Kernels
# ---------------------------------------------------------------------------
def _fused_mlp_logsoftmax_kernel(x_ref, w1_ref, b1_ref, w2_ref, b2_ref,
                                 w3_ref, b3_ref, o_ref):
    """Whole forward (3x Linear + ReLU + LogSoftmax(dim=0)) in one block."""
    x = x_ref[...]                                            # (B, Fp) bf16
    w1 = w1_ref[...]
    w2 = w2_ref[...]
    w3 = w3_ref[...]
    cd = w1.dtype
    h1 = jnp.dot(x, w1, preferred_element_type=jnp.float32) + b1_ref[...]
    h1 = jnp.maximum(h1, 0.0).astype(cd)                      # (B, H0p)
    h2 = jnp.dot(h1, w2, preferred_element_type=jnp.float32) + b2_ref[...]
    h2 = jnp.maximum(h2, 0.0).astype(cd)                      # (B, H1p)
    logits = jnp.dot(h2, w3, preferred_element_type=jnp.float32) + b3_ref[...]
    # LogSoftmax over dim=0 (batch): sublane reduction (XLU slot); no
    # transpose — logits are already lane-dense (OUTp multiple of 128).
    m = jnp.max(logits, axis=0, keepdims=True)
    shifted = logits - m
    lse = jnp.log(jnp.sum(jnp.exp(shifted), axis=0, keepdims=True))
    o_ref[...] = shifted - lse


def _mlp_logits_kernel(x_ref, w1_ref, b1_ref, w2_ref, b2_ref,
                       w3_ref, b3_ref, o_ref):
    """Per-batch-tile logits (no softmax; batch tiles are independent)."""
    x = x_ref[...]
    w1 = w1_ref[...]
    w2 = w2_ref[...]
    w3 = w3_ref[...]
    cd = w1.dtype
    h1 = jnp.dot(x, w1, preferred_element_type=jnp.float32) + b1_ref[...]
    h1 = jnp.maximum(h1, 0.0).astype(cd)
    h2 = jnp.dot(h1, w2, preferred_element_type=jnp.float32) + b2_ref[...]
    h2 = jnp.maximum(h2, 0.0).astype(cd)
    o_ref[...] = jnp.dot(h2, w3, preferred_element_type=jnp.float32) + b3_ref[...]


def _logsoftmax_dim0_kernel(z_ref, o_ref):
    """LogSoftmax over dim=0 for one 128-wide column slab."""
    z = z_ref[...]                                            # (B, 128) f32
    m = jnp.max(z, axis=0, keepdims=True)
    shifted = z - m
    lse = jnp.log(jnp.sum(jnp.exp(shifted), axis=0, keepdims=True))
    o_ref[...] = shifted - lse


# ---------------------------------------------------------------------------
# Parameter handling
# ---------------------------------------------------------------------------
def init_params(key, in_size, layer_array, out_size):
    """PyTorch-Linear-style init: U(-1/sqrt(fan_in), 1/sqrt(fan_in)). Unpadded."""
    dims = [in_size] + list(layer_array[:2]) + [out_size]
    params = {}
    ks = jax.random.split(key, 6)
    for i, (fan_in, fan_out) in enumerate(zip(dims[:-1], dims[1:]), start=1):
        bound = 1.0 / jnp.sqrt(jnp.float32(fan_in))
        params[f"w{i}"] = jax.random.uniform(
            ks[2 * (i - 1)], (fan_in, fan_out), jnp.float32, -bound, bound)
        # Biases kept 2D (1, fan_out) so they broadcast cleanly in-kernel.
        params[f"b{i}"] = jax.random.uniform(
            ks[2 * (i - 1) + 1], (1, fan_out), jnp.float32, -bound, bound)
    return params


def prepare_params(params, compute_dtype=jnp.bfloat16):
    """Pad every weight/bias dim to a multiple of 128 (zero-pad) ONCE and cast
    weights to the MXU compute dtype. Biases stay f32 (added after the MXU).

    Zero padding is exact: padded input features hit zero weight rows; padded
    hidden units stay 0 through ReLU and meet zero weight rows next layer;
    padded output columns never mix (softmax is over dim=0) and are sliced
    away after the call."""
    F, H0 = params["w1"].shape
    H1 = params["w2"].shape[1]
    OUT = params["w3"].shape[1]
    Fp, H0p, H1p, OUTp = (_round_up(d, LANE) for d in (F, H0, H1, OUT))

    def pad2(a, r, c):
        return jnp.pad(a, ((0, r - a.shape[0]), (0, c - a.shape[1])))

    prepped = {
        "w1": pad2(params["w1"], Fp, H0p).astype(compute_dtype),
        "b1": pad2(params["b1"], 1, H0p).astype(jnp.float32),
        "w2": pad2(params["w2"], H0p, H1p).astype(compute_dtype),
        "b2": pad2(params["b2"], 1, H1p).astype(jnp.float32),
        "w3": pad2(params["w3"], H1p, OUTp).astype(compute_dtype),
        "b3": pad2(params["b3"], 1, OUTp).astype(jnp.float32),
    }
    dims = {"F": F, "Fp": Fp, "OUT": OUT, "OUTp": OUTp, "H0p": H0p, "H1p": H1p}
    return prepped, dims


# ---------------------------------------------------------------------------
# Forward wrapper
# ---------------------------------------------------------------------------
def model_forward(x, prepped, dims, *, batch_tile=512, fused_max_batch=512):
    """Forward pass. x: (B, in_size) f32. Returns (B, out_size) f32 log-probs."""
    B, F = x.shape
    assert F == dims["F"], "feature dim mismatch with prepared params"
    Fp, OUT, OUTp = dims["Fp"], dims["OUT"], dims["OUTp"]
    H0p, H1p = dims["H0p"], dims["H1p"]
    cd = prepped["w1"].dtype

    xp = jnp.pad(x, ((0, 0), (0, Fp - F))).astype(cd)
    weight_args = (prepped["w1"], prepped["b1"], prepped["w2"], prepped["b2"],
                   prepped["w3"], prepped["b3"])

    def _bytes(*arrs):
        return int(sum(a.size * a.dtype.itemsize for a in arrs))

    if B <= fused_max_batch:
        # Launch-overhead-bound regime: keep the whole forward in one call.
        vmem = pl.BlockSpec(memory_space=pltpu.MemorySpace.VMEM)
        out_padded = pl.pallas_call(
            _fused_mlp_logsoftmax_kernel,
            out_shape=jax.ShapeDtypeStruct((B, OUTp), jnp.float32),
            in_specs=[vmem] * 7,
            out_specs=vmem,
            cost_estimate=pl.CostEstimate(
                flops=2 * B * (Fp * H0p + H0p * H1p + H1p * OUTp),
                transcendentals=B * OUTp,
                bytes_accessed=_bytes(xp, *weight_args) + B * OUTp * 4),
        )(xp, *weight_args)
        return out_padded[:, :OUT]

    # ---- Batch-tiled path (large B) ----
    TB = batch_tile
    Bp = _round_up(B, TB)
    xp = jnp.pad(xp, ((0, Bp - B), (0, 0)))
    nb = Bp // TB

    logits = pl.pallas_call(
        _mlp_logits_kernel,
        out_shape=jax.ShapeDtypeStruct((Bp, OUTp), jnp.float32),
        grid_spec=pltpu.PrefetchScalarGridSpec(
            num_scalar_prefetch=0,
            grid=(nb,),
            in_specs=[
                pl.BlockSpec((TB, Fp), lambda i: (i, 0)),
                # Weights/biases: same block every step -> resident in VMEM,
                # fetched from HBM once for the whole grid.
                pl.BlockSpec((Fp, H0p), lambda i: (0, 0)),
                pl.BlockSpec((1, H0p), lambda i: (0, 0)),
                pl.BlockSpec((H0p, H1p), lambda i: (0, 0)),
                pl.BlockSpec((1, H1p), lambda i: (0, 0)),
                pl.BlockSpec((H1p, OUTp), lambda i: (0, 0)),
                pl.BlockSpec((1, OUTp), lambda i: (0, 0)),
            ],
            out_specs=pl.BlockSpec((TB, OUTp), lambda i: (i, 0)),
        ),
        compiler_params=pltpu.CompilerParams(
            # Batch tiles are independent (dim=0 softmax split into a second
            # kernel), so this axis is safely "parallel" (megacore on v7x).
            dimension_semantics=("parallel",),
            # Conservative: fits v7x's smaller VMEM (64 MiB physical).
            vmem_limit_bytes=32 * 1024 * 1024,
        ),
        cost_estimate=pl.CostEstimate(
            flops=2 * Bp * (Fp * H0p + H0p * H1p + H1p * OUTp),
            transcendentals=0,
            bytes_accessed=_bytes(xp, *weight_args) + Bp * OUTp * 4),
    )(xp, *weight_args)

    # Drop padded batch rows BEFORE the dim=0 softmax (they must not
    # contribute to the per-column normalization).
    logits = logits[:B]

    # LogSoftmax over dim=0, tiled over 128-wide column slabs.
    # TODO(synk): for extremely large B (a (B,128) block no longer fits VMEM)
    # this needs a two-pass batch-tiled max / sum-exp reduction.
    nc = OUTp // LANE
    out_padded = pl.pallas_call(
        _logsoftmax_dim0_kernel,
        out_shape=jax.ShapeDtypeStruct((B, OUTp), jnp.float32),
        grid_spec=pltpu.PrefetchScalarGridSpec(
            num_scalar_prefetch=0,
            grid=(nc,),
            in_specs=[pl.BlockSpec((B, LANE), lambda j: (0, j))],
            out_specs=pl.BlockSpec((B, LANE), lambda j: (0, j)),
        ),
        compiler_params=pltpu.CompilerParams(
            dimension_semantics=("parallel",),
            vmem_limit_bytes=32 * 1024 * 1024,
        ),
        cost_estimate=pl.CostEstimate(
            flops=3 * B * OUTp,
            transcendentals=B * OUTp,
            bytes_accessed=2 * B * OUTp * 4),
    )(logits)
    return out_padded[:, :OUT]


# ---------------------------------------------------------------------------
# References
# ---------------------------------------------------------------------------
def reference_forward_f32(x, p):
    h1 = jnp.maximum(x @ p["w1"] + p["b1"], 0.0)
    h2 = jnp.maximum(h1 @ p["w2"] + p["b2"], 0.0)
    logits = h2 @ p["w3"] + p["b3"]
    return jax.nn.log_softmax(logits, axis=0)


def reference_forward_mixed(x, p, compute_dtype=jnp.bfloat16):
    """Same bf16-operand / f32-accumulate arithmetic as the kernel."""
    cd = compute_dtype
    h1 = jnp.maximum(
        jnp.dot(x.astype(cd), p["w1"].astype(cd),
                preferred_element_type=jnp.float32) + p["b1"], 0.0)
    h2 = jnp.maximum(
        jnp.dot(h1.astype(cd), p["w2"].astype(cd),
                preferred_element_type=jnp.float32) + p["b2"], 0.0)
    logits = jnp.dot(h2.astype(cd), p["w3"].astype(cd),
                     preferred_element_type=jnp.float32) + p["b3"]
    return jax.nn.log_softmax(logits, axis=0)


if __name__ == "__main__":
    key = jax.random.PRNGKey(0)
    k_x, k_p, k_x2 = jax.random.split(key, 3)

    # Small shapes consistent with the module: in_size=32, layer_array=[49,49],
    # out_size=28 (module default), batch=8.
    B, in_size, out_size = 8, 32, 28
    layer_array = [49, 49]

    x = jax.random.normal(k_x, (B, in_size), dtype=jnp.float32)
    params = init_params(k_p, in_size, layer_array, out_size)
    prepped, dims = prepare_params(params, compute_dtype=jnp.bfloat16)

    # Fused single-call path (small batch: launch-overhead bound).
    fwd = jax.jit(lambda xv: model_forward(xv, prepped, dims))
    out = jax.block_until_ready(fwd(x))
    ref_mixed = reference_forward_mixed(x, params)
    ref_f32 = reference_forward_f32(x, params)
    assert out.shape == (B, out_size)
    assert jnp.allclose(out, ref_mixed, atol=2e-3, rtol=2e-3), "vs bf16 ref"
    assert jnp.allclose(out, ref_f32, atol=5e-2, rtol=5e-2), "vs f32 ref"

    # Batch-tiled path: grid over batch tiles (resident weights, 'parallel')
    # followed by the separate column-tiled LogSoftmax(dim=0) kernel. Uses a
    # small tile here purely to exercise multi-tile + batch-padding handling.
    B2 = 40
    x2 = jax.random.normal(k_x2, (B2, in_size), dtype=jnp.float32)
    fwd_tiled = jax.jit(
        lambda xv: model_forward(xv, prepped, dims, batch_tile=16,
                                 fused_max_batch=0))
    out2 = jax.block_until_ready(fwd_tiled(x2))
    ref2 = reference_forward_mixed(x2, params)
    assert out2.shape == (B2, out_size)
    assert jnp.allclose(out2, ref2, atol=2e-3, rtol=2e-3), "tiled path mismatch"

    print("KERNEL_OK")
</pallas_src>

<mosaic_0001>
module attributes {stable_mosaic.version = 11 : i64} {
  func.func @_fused_mlp_logsoftmax_kernel(%arg0: memref<8x128xbf16, #tpu.memory_space<vmem>>, %arg1: memref<128x128xbf16, #tpu.memory_space<vmem>>, %arg2: memref<1x128xf32, #tpu.memory_space<vmem>>, %arg3: memref<128x128xbf16, #tpu.memory_space<vmem>>, %arg4: memref<1x128xf32, #tpu.memory_space<vmem>>, %arg5: memref<128x128xbf16, #tpu.memory_space<vmem>>, %arg6: memref<1x128xf32, #tpu.memory_space<vmem>>, %arg7: memref<8x128xf32, #tpu.memory_space<vmem>>) attributes {dimension_semantics = [], scalar_prefetch = 0 : i64, scratch_operands = 0 : i64, tpu.core_type = #tpu.core_type<tc>} {
    %c0 = arith.constant 0 : index
    %c0_0 = arith.constant 0 : index
    %0 = vector.load %arg0[%c0, %c0_0] : memref<8x128xbf16, #tpu.memory_space<vmem>>, vector<8x128xbf16>
    %c0_1 = arith.constant 0 : index
    %c0_2 = arith.constant 0 : index
    %1 = vector.load %arg1[%c0_1, %c0_2] : memref<128x128xbf16, #tpu.memory_space<vmem>>, vector<128x128xbf16>
    %c0_3 = arith.constant 0 : index
    %c0_4 = arith.constant 0 : index
    %2 = vector.load %arg3[%c0_3, %c0_4] : memref<128x128xbf16, #tpu.memory_space<vmem>>, vector<128x128xbf16>
    %c0_5 = arith.constant 0 : index
    %c0_6 = arith.constant 0 : index
    %3 = vector.load %arg5[%c0_5, %c0_6] : memref<128x128xbf16, #tpu.memory_space<vmem>>, vector<128x128xbf16>
    %cst = arith.constant dense<0.000000e+00> : vector<8x128xf32>
    %4 = tpu.matmul %0, %1, %cst {dimension_numbers = #tpu.dot_dimension_numbers<[1], [0], [0], [1], [0, 0, 1, 1], [], []>} : vector<8x128xbf16>, vector<128x128xbf16>, vector<8x128xf32> -> vector<8x128xf32>
    %c0_7 = arith.constant 0 : index
    %c0_8 = arith.constant 0 : index
    %5 = vector.load %arg2[%c0_7, %c0_8] : memref<1x128xf32, #tpu.memory_space<vmem>>, vector<1x128xf32>
    %6 = vector.broadcast %5 : vector<1x128xf32> to vector<8x128xf32>
    %7 = arith.addf %4, %6 : vector<8x128xf32>
    %cst_9 = arith.constant 0.000000e+00 : f32
    %8 = vector.broadcast %cst_9 : f32 to vector<8x128xf32>
    %9 = arith.maximumf %7, %8 : vector<8x128xf32>
    %10 = arith.truncf %9 : vector<8x128xf32> to vector<8x128xbf16>
    %cst_10 = arith.constant dense<0.000000e+00> : vector<8x128xf32>
    %11 = tpu.matmul %10, %2, %cst_10 {dimension_numbers = #tpu.dot_dimension_numbers<[1], [0], [0], [1], [0, 0, 1, 1], [], []>} : vector<8x128xbf16>, vector<128x128xbf16>, vector<8x128xf32> -> vector<8x128xf32>
    %c0_11 = arith.constant 0 : index
    %c0_12 = arith.constant 0 : index
    %12 = vector.load %arg4[%c0_11, %c0_12] : memref<1x128xf32, #tpu.memory_space<vmem>>, vector<1x128xf32>
    %13 = vector.broadcast %12 : vector<1x128xf32> to vector<8x128xf32>
    %14 = arith.addf %11, %13 : vector<8x128xf32>
    %cst_13 = arith.constant 0.000000e+00 : f32
    %15 = vector.broadcast %cst_13 : f32 to vector<8x128xf32>
    %16 = arith.maximumf %14, %15 : vector<8x128xf32>
    %17 = arith.truncf %16 : vector<8x128xf32> to vector<8x128xbf16>
    %cst_14 = arith.constant dense<0.000000e+00> : vector<8x128xf32>
    %18 = tpu.matmul %17, %3, %cst_14 {dimension_numbers = #tpu.dot_dimension_numbers<[1], [0], [0], [1], [0, 0, 1, 1], [], []>} : vector<8x128xbf16>, vector<128x128xbf16>, vector<8x128xf32> -> vector<8x128xf32>
    %c0_15 = arith.constant 0 : index
    %c0_16 = arith.constant 0 : index
    %19 = vector.load %arg6[%c0_15, %c0_16] : memref<1x128xf32, #tpu.memory_space<vmem>>, vector<1x128xf32>
    %20 = vector.broadcast %19 : vector<1x128xf32> to vector<8x128xf32>
    %21 = arith.addf %18, %20 : vector<8x128xf32>
    %cst_17 = arith.constant dense<0xFF800000> : vector<128xf32>
    %22 = vector.multi_reduction <maximumf>, %21, %cst_17 [0] : vector<8x128xf32> to vector<128xf32>
    %23 = vector.shape_cast %22 : vector<128xf32> to vector<1x128xf32>
    %24 = vector.broadcast %23 : vector<1x128xf32> to vector<8x128xf32>
    %25 = arith.subf %21, %24 : vector<8x128xf32>
    %26 = math.exp %25 : vector<8x128xf32>
    %cst_18 = arith.constant dense<0.000000e+00> : vector<128xf32>
    %27 = vector.multi_reduction <add>, %26, %cst_18 [0] : vector<8x128xf32> to vector<128xf32>
    %28 = vector.shape_cast %27 : vector<128xf32> to vector<1x128xf32>
    %29 = math.log %28 : vector<1x128xf32>
    %30 = vector.broadcast %29 : vector<1x128xf32> to vector<8x128xf32>
    %31 = arith.subf %25, %30 : vector<8x128xf32>
    %c0_19 = arith.constant 0 : index
    %c0_20 = arith.constant 0 : index
    %32 = vector.load %arg7[%c0_19, %c0_20] : memref<8x128xf32, #tpu.memory_space<vmem>>, vector<8x128xf32>
    tpu.vector_store %arg7[%c0_19, %c0_20], %31 {strides = array<i32>} : memref<8x128xf32, #tpu.memory_space<vmem>>, vector<8x128xf32>,
    return
  }
}

</mosaic_0001>

<bundles_post_ra>
// kernel: _lambda_.1
= control target key start
LH: loop header
LB: loop body
LE: loop exit
PB: predicated region body
PF: predicated region fallthrough
CT: control target
= control target key end

     0   :  { %12 = vsyncpa [#allocation3], 0  ;;  %s840_s0 = inlined_call_operand.vmem [shape: bf16[8,128], index: 0, kind: input, shape index: {}]   ;;  %s841_s1 = inlined_call_operand.hbm [shape: bf16[128,128], index: 1, kind: input, shape index: {}]   ;;  %s842_s2 = inlined_call_operand.vmem [shape: f32[1,128], index: 2, kind: input, shape index: {}]   ;;  %s843_s3 = inlined_call_operand.hbm [shape: bf16[128,128], index: 3, kind: input, shape index: {}]   ;;  %s844_s4 = inlined_call_operand.vmem [shape: f32[1,128], index: 4, kind: input, shape index: {}]   ;;  %s845_s5 = inlined_call_operand.hbm [shape: bf16[128,128], index: 5, kind: input, shape index: {}]   ;;  %s846_s6 = inlined_call_operand.vmem [shape: f32[1,128], index: 6, kind: input, shape index: {}]   ;;  %s847_s7 = inlined_call_operand.hbm [shape: f32[8,128], index: 7, kind: output, shape index: {}]  }
   0x1   :  { %13 = vsyncpa [#allocation6], 0 }
   0x2   :  { %14 = vsyncpa [#allocation4], 0  ;;  %s686_s24 = smov [#allocation5]   ;;  %s687_s26 = smov [#allocation2]  }
   0x3   :  { %s36_s25 = sshll.u32 %s686_s24, 4  ;;  %s22_s27 = sshll.u32 %s687_s26, 4  ;;  %s37_s25 = int_to_ptr.vmem [resolvable:$true] %s36_s25  ;;  %s734_s27 = int_to_ptr.vmem [resolvable:$true] %s22_s27 }
   0x4   :  { %s592_s30 = scalar_lea.hbm %s843_s3, 1024 }
   0x5   :  { %p593_p0 = scmp.ne.s32.totalorder %s843_s3, %s592_s30  ;;  %p596_p1 = scmp.lt.u32.totalorder %s592_s30, %s843_s3 }
   0x7   :  { %p598_p2 = pnand %p596_p1, %p593_p0 }
   0x9   :  { %601 = shalt.err (!%p598_p2)
}
   0xa   :  { %s602_s12 = scalar_lea.vmem %s37_s25, 1024  ;;  %p607_p4 = scmp.lt.s32.totalorder %s37_s25, %s37_s25 }
   0xb   :  { %p603_p3 = scmp.ne.s32.totalorder %s37_s25, %s602_s12  ;;  %p608_p5 = scmp.lt.s32.totalorder %s602_s12, %s602_s12 }
   0xd   :  { %p609_p6 = por %p608_p5, %p607_p4 }
   0xf   :  { %p610_p7 = pnand %p609_p6, %p603_p3 }
  0x11   :  { %613 = shalt.err (!%p610_p7)
}
  0x12   :  { %s688_s13 = smov 64   ;;  %s689_s14 = smov 4  }
  0x13   :  { %42 = dma.hbm_to_vmem [thread:$0]  %s843_s3, 1024, %s37_s25, [#allocation6], %s688_s13, %s688_s13, %s689_s14  }
  0x14   :  { %s614_s19 = scalar_lea.hbm %s841_s1, 1024 }
  0x15   :  { %p615_p8 = scmp.ne.s32.totalorder %s841_s1, %s614_s19  ;;  %p618_p9 = scmp.lt.u32.totalorder %s614_s19, %s841_s1 }
  0x17   :  { %p620_p10 = pnand %p618_p9, %p615_p8 }
  0x19   :  { %623 = shalt.err (!%p620_p10)
}
  0x1a   :  { %s624_s24 = scalar_lea.vmem %s734_s27, 1024  ;;  %p629_p12 = scmp.lt.s32.totalorder %s734_s27, %s734_s27 }
  0x1b   :  { %p625_p11 = scmp.ne.s32.totalorder %s734_s27, %s624_s24  ;;  %p630_p13 = scmp.lt.s32.totalorder %s624_s24, %s624_s24 }
  0x1d   :  { %p631_p0 = por %p630_p13, %p629_p12 }
  0x1f   :  { %p632_p1 = pnand %p631_p0, %p625_p11 }
  0x21   :  { %635 = shalt.err (!%p632_p1)
}
  0x22   :  { %28 = dma.hbm_to_vmem [thread:$0]  %s841_s1, 1024, %s734_s27, [#allocation3], %s688_s13, %s688_s13, %s689_s14  }
  0x23   :  { %s690_s26 = smov [#allocation7]   ;;  %s636_s8 = scalar_lea.hbm %s845_s5, 1024 }
  0x24   :  { %s50_s28 = sshll.u32 %s690_s26, 4  ;;  %p637_p2 = scmp.ne.s32.totalorder %s845_s5, %s636_s8  ;;  %s51_s28 = int_to_ptr.vmem [resolvable:$true] %s50_s28 }
  0x25   :  { %p640_p3 = scmp.lt.u32.totalorder %s636_s8, %s845_s5 }
  0x27   :  { %p642_p4 = pnand %p640_p3, %p637_p2 }
  0x29   :  { %645 = shalt.err (!%p642_p4)
}
  0x2a   :  { %s646_s15 = scalar_lea.vmem %s51_s28, 1024  ;;  %p651_p6 = scmp.lt.s32.totalorder %s51_s28, %s51_s28 }
  0x2b   :  { %p647_p5 = scmp.ne.s32.totalorder %s51_s28, %s646_s15  ;;  %p652_p7 = scmp.lt.s32.totalorder %s646_s15, %s646_s15 }
  0x2d   :  { %p653_p8 = por %p652_p7, %p651_p6 }
  0x2f   :  { %p654_p9 = pnand %p653_p8, %p647_p5 }
  0x31   :  { %657 = shalt.err (!%p654_p9)
}
  0x32   :  { %56 = dma.hbm_to_vmem [thread:$0]  %s845_s5, 1024, %s51_s28, [#allocation6], %s688_s13, %s688_s13, %s689_s14  }
  0x33   :  { %680 = dma.done.wait [#allocation3], 1024  }
  0x34   :  { %681 = vsyncadd [#allocation3], 4294966272 }
  0x35   :  { %682 = dma.done.wait [#allocation6], 2048  }
  0x36   :  { %683 = vsyncadd [#allocation6], 4294965248  ;;  %v691_v0 = vmov 0.0   ;;  %vm692_vm0 = vmmov 0   ;;  %v564_v1 = vld [vmem:[#allocation2] sm:$0xff]   ;;  %v565_v2 = vld [vmem:[#allocation2 + $0x8] sm:$0xff]  }
  0x37   :  { %496 = vmatprep.subr.bf16.mxu0 %v691_v0  ;;  %512 = vmatprep.mubr.msk.bf16.mxu0 %vm692_vm0, %v691_v0  ;;  %v566_v3 = vld [vmem:[#allocation2 + $0x10] sm:$0xff]   ;;  %v572_v4 = vld [vmem:[#allocation5] sm:$0xff]   ;;  %v567_v5 = vld [vmem:[#allocation2 + $0x18] sm:$0xff]  }
  0x38   :  { %516 = vmatprep.subr.bf16.mxu1 %v691_v0  ;;  %532 = vmatprep.mubr.msk.bf16.mxu1 %vm692_vm0, %v691_v0  ;;  %v573_v6 = vld [vmem:[#allocation5 + $0x8] sm:$0xff]   ;;  %v568_v7 = vld [vmem:[#allocation2 + $0x20] sm:$0xff]   ;;  %v574_v8 = vld [vmem:[#allocation5 + $0x10] sm:$0xff]  }
  0x39   :  { %497 = vmatpush3.bf16.msra.mxu0 %v564_v1  ;;  %517 = vmatpush3.bf16.msra.mxu1 %v572_v4  ;;  %v569_v9 = vld [vmem:[#allocation2 + $0x28] sm:$0xff]   ;;  %v575_v10 = vld [vmem:[#allocation5 + $0x18] sm:$0xff]   ;;  %v570_v11 = vld [vmem:[#allocation2 + $0x30] sm:$0xff]  }
  0x3a   :  { %498 = vmatprep.subr.bf16.mxu0 %v691_v0  ;;  %518 = vmatprep.subr.bf16.mxu1 %v691_v0  ;;  %v576_v12 = vld [vmem:[#allocation5 + $0x20] sm:$0xff]   ;;  %v571_v13 = vld [vmem:[#allocation2 + $0x38] sm:$0xff]   ;;  %v577_v14 = vld [vmem:[#allocation5 + $0x28] sm:$0xff]  }
  0x3b   :  { %v69_v15 = vld [vmem:[%s840_s0] sm:$0xf]  ;;  %v578_v16 = vld [vmem:[#allocation5 + $0x30] sm:$0xff]   ;;  %v579_v17 = vld [vmem:[#allocation5 + $0x38] sm:$0xff]  }
  0x3c   :  { %v580_v18 = vld [vmem:[#allocation7] sm:$0xff]   ;;  %v581_v19 = vld [vmem:[#allocation7 + $0x8] sm:$0xff]   ;;  %v582_v20 = vld [vmem:[#allocation7 + $0x10] sm:$0xff]  }
  0x3d   :  { %499 = vmatpush3.bf16.msra.mxu0 %v565_v2  ;;  %519 = vmatpush3.bf16.msra.mxu1 %v573_v6  ;;  %v583_v21 = vld [vmem:[#allocation7 + $0x18] sm:$0xff]   ;;  %v584_v22 = vld [vmem:[#allocation7 + $0x20] sm:$0xff]   ;;  %v585_v23 = vld [vmem:[#allocation7 + $0x28] sm:$0xff]  }
  0x3e   :  { %500 = vmatprep.subr.bf16.mxu0 %v691_v0  ;;  %520 = vmatprep.subr.bf16.mxu1 %v691_v0  ;;  %v442_v24 = vld [vmem:[%s842_s2] ss:$0 sm:$0xff]  ;;  %v586_v32 = vld [vmem:[#allocation7 + $0x30] sm:$0xff]   ;;  %v587_v33 = vld [vmem:[#allocation7 + $0x38] sm:$0xff]  }
  0x3f   :  { %v451_v34 = vld [vmem:[%s844_s4] ss:$0 sm:$0xff]  ;;  %s693_s4 = smov [#allocation8]  }
  0x40   :  { %v460_v42 = vld [vmem:[%s846_s6] ss:$0 sm:$0xff]  ;;  %s432_s6 = sshll.u32 %s693_s4, 4  ;;  %s433_s6 = int_to_ptr.vmem [resolvable:$true] %s432_s6 }
  0x41   :  { %501 = vmatpush3.bf16.msra.mxu0 %v566_v3  ;;  %521 = vmatpush3.bf16.msra.mxu1 %v574_v8  ;;  %s658_s19 = scalar_lea.vmem %s433_s6, 128  ;;  %p663_p11 = scmp.lt.s32.totalorder %s433_s6, %s433_s6 }
  0x42   :  { %502 = vmatprep.subr.bf16.mxu0 %v691_v0  ;;  %522 = vmatprep.subr.bf16.mxu1 %v691_v0  ;;  %p659_p10 = scmp.ne.s32.totalorder %s433_s6, %s658_s19  ;;  %p664_p12 = scmp.lt.s32.totalorder %s658_s19, %s658_s19 }
  0x44   :  { %p665_p13 = por %p664_p12, %p663_p11 }
  0x45   :  { %503 = vmatpush3.bf16.msra.mxu0 %v567_v5  ;;  %523 = vmatpush3.bf16.msra.mxu1 %v575_v10 }
  0x46   :  { %504 = vmatprep.subr.bf16.mxu0 %v691_v0  ;;  %524 = vmatprep.subr.bf16.mxu1 %v691_v0  ;;  %p666_p0 = pnand %p665_p13, %p659_p10 }
  0x49   :  { %505 = vmatpush3.bf16.msra.mxu0 %v568_v7  ;;  %525 = vmatpush3.bf16.msra.mxu1 %v576_v12 }
  0x4a   :  { %506 = vmatprep.subr.bf16.mxu0 %v691_v0  ;;  %526 = vmatprep.subr.bf16.mxu1 %v691_v0 }
  0x4d   :  { %507 = vmatpush3.bf16.msra.mxu0 %v569_v9  ;;  %527 = vmatpush3.bf16.msra.mxu1 %v577_v14 }
  0x4e   :  { %508 = vmatprep.subr.bf16.mxu0 %v691_v0  ;;  %528 = vmatprep.subr.bf16.mxu1 %v691_v0 }
  0x51   :  { %509 = vmatpush3.bf16.msra.mxu0 %v570_v11  ;;  %529 = vmatpush3.bf16.msra.mxu1 %v578_v16 }
  0x52   :  { %510 = vmatprep.subr.bf16.mxu0 %v691_v0  ;;  %530 = vmatprep.subr.bf16.mxu1 %v691_v0 }
  0x55   :  { %511 = vmatpush3.bf16.msra.mxu0 %v571_v13  ;;  %531 = vmatpush3.bf16.msra.mxu1 %v579_v17 }
  0x56   :  { %536 = vmatprep.subr.bf16.mxu0 %v691_v0 }
  0x58   :  { %513 = vmatmul.mubr.bf16.vlgmr.msra.gmra.mrb[0].mxu0 %v69_v15 }
  0x59   :  { %552 = vmatprep.mubr.msk.bf16.mxu0 %vm692_vm0, %v691_v0  ;;  %537 = vmatpush3.bf16.msra.mxu0 %v580_v18 }
  0x5a   :  { %538 = vmatprep.subr.bf16.mxu0 %v691_v0 }
  0x5d   :  { %539 = vmatpush3.bf16.msra.mxu0 %v581_v19 }
  0x5e   :  { %540 = vmatprep.subr.bf16.mxu0 %v691_v0 }
  0x61   :  { %541 = vmatpush3.bf16.msra.mxu0 %v582_v20 }
  0x62   :  { %542 = vmatprep.subr.bf16.mxu0 %v691_v0 }
  0x65   :  { %543 = vmatpush3.bf16.msra.mxu0 %v583_v21 }
  0x66   :  { %544 = vmatprep.subr.bf16.mxu0 %v691_v0 }
  0x69   :  { %545 = vmatpush3.bf16.msra.mxu0 %v584_v22 }
  0x6a   :  { %546 = vmatprep.subr.bf16.mxu0 %v691_v0 }
  0x6d   :  { %547 = vmatpush3.bf16.msra.mxu0 %v585_v23 }
  0x6e   :  { %548 = vmatprep.subr.bf16.mxu0 %v691_v0 }
  0x71   :  { %549 = vmatpush3.bf16.msra.mxu0 %v586_v32 }
  0x72   :  { %550 = vmatprep.subr.bf16.mxu0 %v691_v0 }
  0x75   :  { %551 = vmatpush3.bf16.msra.mxu0 %v587_v33 }
 0x12b   :  { %v207_v25 = vpop.f32.mrb[0].mxu0 }
 0x12c   :  { %v208_v26 = vadd.f32 %v442_v24, %v207_v25  ;;  %v514_v27 = vpop.f32.mrb[1].mxu0 }
 0x12d   :  { %v210_v28 = vpop.f32.mrb[2].mxu0 }
 0x12e   :  { %v213_v29 = vmax.f32 %v208_v26, 0.0  ;;  %v515_v30 = vpop.f32.mrb[3].mxu0 }
 0x130   :  { %v214_v31 = vpack.c.bf16 %v213_v29, %v213_v29 }
 0x132   :  { %533 = vmatmul.mubr.bf16.vlgmr.msra.gmra.mrb[0].mxu1 %v214_v31 }
 0x205   :  { %v304_v35 = vpop.f32.mrb[0].mxu1 }
 0x206   :  { %v305_v36 = vadd.f32 %v451_v34, %v304_v35  ;;  %v534_v37 = vpop.f32.mrb[1].mxu1 }
 0x207   :  { %v307_v38 = vpop.f32.mrb[2].mxu1 }
 0x208   :  { %v310_v39 = vmax.f32 %v305_v36, 0.0  ;;  %v535_v40 = vpop.f32.mrb[3].mxu1 }
 0x20a   :  { %v311_v41 = vpack.c.bf16 %v310_v39, %v310_v39 }
 0x20c   :  { %553 = vmatmul.mubr.bf16.vlgmr.msra.gmra.mrb[4].mxu0 %v311_v41 }
 0x2df   :  { %v401_v43 = vpop.f32.mrb[4].mxu0 }
 0x2e0   :  { %v402_v44 = vadd.f32 %v460_v42, %v401_v43  ;;  %v554_v45 = vpop.f32.mrb[5].mxu0 }
 0x2e1   :  { %v404_v46 = vpop.f32.mrb[6].mxu0 }
 0x2e2   :  { %v407_v47 = vrot.slane %v402_v44, 4  ;;  %v555_v48 = vpop.f32.mrb[7].mxu0 }
 0x2e4   :  { %v408_v49 = vmax.f32 %v402_v44, %v407_v47 }
 0x2e6   :  { %v409_v50 = vrot.slane %v408_v49, 2 }
 0x2e8   :  { %v410_v51 = vmax.f32 %v408_v49, %v409_v50 }
 0x2ea   :  { %v411_v52 = vrot.slane %v410_v51, 1 }
 0x2ec   :  { %v412_v53 = vmax.f32 %v410_v51, %v411_v52 }
 0x2ee   :  { %v413_v54 = vsub.f32 %v402_v44, %v412_v53 }
 0x2f0   :  { %v414_v55 = vmul.f32 1.442695, %v413_v54 }
 0x2f2   :  { %588 = vpow2.f32 %v414_v55 }
 0x2fc   :  { %v589_v56 = vpop.eup %588 }
 0x2fd   :  { %v416_v57 = vrot.slane %v589_v56, 4 }
 0x2ff   :  { %v417_v58 = vadd.f32 %v589_v56, %v416_v57 }
 0x301   :  { %v418_v59 = vrot.slane %v417_v58, 2 }
 0x303   :  { %v419_v60 = vadd.f32 %v418_v59, %v417_v58 }
 0x305   :  { %v420_v61 = vrot.slane %v419_v60, 1 }
 0x307   :  { %v421_v62 = vadd.f32 %v420_v61, %v419_v60 }
 0x309   :  { %590 = vlog2.f32 %v421_v62 }
 0x313   :  { %v591_v63 = vpop.eup %590 }
 0x314   :  { %v423_v0 = vmul.f32 0.6931472, %v591_v63 }
 0x316   :  { %v424_v1 = vsub.f32 %v413_v54, %v423_v0 }
 0x318   :  { %425 = vst [vmem:[#allocation8] sm:$0xff] %v424_v1 }
 0x319   :  { %669 = shalt.err (!%p666_p0)
}
 0x31a   :  { %s670_s22 = scalar_lea.hbm %s847_s7, 128 }
 0x31b   :  { %p671_p1 = scmp.ne.s32.totalorder %s847_s7, %s670_s22  ;;  %p674_p2 = scmp.lt.u32.totalorder %s670_s22, %s847_s7 }
 0x31d   :  { %p676_p3 = pnand %p674_p2, %p671_p1 }
 0x31f   :  { %679 = shalt.err (!%p676_p3)
}
 0x320   :  { %435 = dma.vmem_to_hbm [thread:$0]  %s433_s6, 128, %s847_s7, [#allocation4]  }
 0x321   :  { %684 = dma.done.wait [#allocation4], 128  }
 0x322   :  { %685 = vsyncadd [#allocation4], 4294967168 }
 0x323   :  { %439 = vsyncpa [#allocation3], 1 }
 0x324   :  { %440 = vsyncpa [#allocation6], 1 }
 0x325   :  { %441 = vsyncpa [#allocation4], 1 }

</bundles_post_ra>
